<compile_context>
chip_gen: v7x
topology: tpu7x:2x2x1
jax: 0.10.0
libtpu: 0.0.40
codegen_flags: <defaults>
</compile_context>

<pallas_src>
import math

import jax
import jax.numpy as jnp
from jax import lax
from jax.experimental import pallas as pl
from jax.experimental.pallas import tpu as pltpu


# ---------------------------------------------------------------------------
# Kernel 1: per-batch xxT accumulation over N tiles, finalize M = gamma*(xxT@W)
# ---------------------------------------------------------------------------
def _xxt_m_kernel(gamma_ref, w_ref, x_ref, m_ref, acc_ref):
    # gamma_ref: SMEM (1, 1) f32
    # w_ref:     VMEM (C, C) bf16 spectral-normalized pointwise-conv weight
    # x_ref:     VMEM (1, C, TN) f32 one spatial tile of one batch element
    # m_ref:     VMEM (1, C, C) bf16 output (written once, at the last N tile)
    # acc_ref:   VMEM (C, C) f32 xxT accumulator (persists across the N axis)
    n = pl.program_id(1)

    @pl.when(n == 0)
    def _init():
        acc_ref[...] = jnp.zeros_like(acc_ref)

    xb = x_ref[0].astype(jnp.bfloat16)                      # (C, TN) bf16 for MXU
    # xxT_tile = x_tile @ x_tile^T, contract over spatial lanes, f32 accumulate.
    acc_ref[...] += lax.dot_general(
        xb, xb, (((1,), (1,)), ((), ())),
        preferred_element_type=jnp.float32,
    )

    @pl.when(n == pl.num_programs(1) - 1)
    def _finalize():
        g = gamma_ref[0, 0]
        m = jnp.dot(
            acc_ref[...].astype(jnp.bfloat16), w_ref[...],
            preferred_element_type=jnp.float32,
        )                                                    # (C, C) = xxT @ W
        m_ref[0] = (g * m).astype(m_ref.dtype)               # fold gamma into M


# ---------------------------------------------------------------------------
# Kernel 2: stream x tiles, out_tile = M @ x_tile + x_tile
# ---------------------------------------------------------------------------
def _apply_kernel(m_ref, x_ref, o_ref):
    # m_ref: VMEM (1, C, C) bf16 (gamma already folded in)
    # x_ref: VMEM (1, C, TN) f32
    # o_ref: VMEM (1, C, TN) f32
    x = x_ref[0]                                             # (C, TN) f32
    o = jnp.dot(m_ref[0], x.astype(jnp.bfloat16),
                preferred_element_type=jnp.float32)          # (C, TN) f32
    o_ref[0] = (o + x).astype(o_ref.dtype)                   # residual in f32


# ---------------------------------------------------------------------------
# Wrapper
# ---------------------------------------------------------------------------
def _pick_tile_n(N, C):
    """Largest lane-dense N tile (multiple of 128) that divides N, bounded so a
    (C, TN) f32 tile stays ~<= 2 MiB. Falls back to the full N if it is small or
    nothing divides it."""
    cap = max(128, min(2048, ((1 << 19) // max(C, 1)) // 128 * 128))
    if N <= cap:
        return N
    for t in range(cap, 0, -128):
        if N % t == 0:
            return t
    # TODO(synk): ragged N (no multiple-of-128 divisor) would need masking of the
    # out-of-bounds lanes in the xxT pass; fall back to the full-N block instead.
    return N


def _vmem_limit_bytes(C, tn):
    x_tile = C * tn * 4                       # f32 (C, TN) tile
    est = (
        2 * 2 * x_tile                        # double-buffered x in + out tiles
        + 4 * C * C * 2                       # W + M bf16 blocks, double-buffered
        + C * C * 4                           # f32 xxT accumulator scratch
        + 4 * x_tile                          # in-kernel intermediates (bf16 cast, dot out)
    )
    # At least raise v5e's 16 MiB scoped default; stay well below v7x's 64 MiB physical.
    return min(max(est, 32 * 1024 * 1024), 50 * 1024 * 1024)


def simple_self_attention(x_nchw, weight, gamma, *, tile_n=None):
    """x_nchw: (B, C, H, W) f32; weight: (C, C) spectral-normalized f32; gamma: (1, 1) f32."""
    B, C, H, W = x_nchw.shape
    N = H * W
    x = x_nchw.reshape(B, C, N)
    w_bf16 = weight.astype(jnp.bfloat16)
    gamma = jnp.asarray(gamma, jnp.float32).reshape(1, 1)

    tn = tile_n if tile_n is not None else _pick_tile_n(N, C)
    assert N % tn == 0, (N, tn)
    nt = N // tn
    vmem_limit = _vmem_limit_bytes(C, tn)

    # Pass 1: M[b] = gamma * (x[b] @ x[b]^T) @ W      (B, C, C) bf16
    m = pl.pallas_call(
        _xxt_m_kernel,
        out_shape=jax.ShapeDtypeStruct((B, C, C), jnp.bfloat16),
        grid_spec=pltpu.PrefetchScalarGridSpec(
            num_scalar_prefetch=0,
            grid=(B, nt),
            in_specs=[
                # gamma: tiny scalar -> SMEM, untiled
                pl.BlockSpec(memory_space=pltpu.MemorySpace.SMEM),
                # weight: full (C, C) each step (small)
                pl.BlockSpec((C, C), lambda b, n: (0, 0)),
                # x: one (C, TN) spatial tile of one batch element
                pl.BlockSpec((1, C, tn), lambda b, n: (b, 0, n)),
            ],
            out_specs=pl.BlockSpec((1, C, C), lambda b, n: (b, 0, 0)),
            scratch_shapes=[pltpu.VMEM((C, C), jnp.float32)],
        ),
        compiler_params=pltpu.CompilerParams(
            dimension_semantics=("parallel", "arbitrary"),
            vmem_limit_bytes=vmem_limit,
        ),
    )(gamma, w_bf16, x)

    # Pass 2: out[b, :, tile] = M[b] @ x[b, :, tile] + x[b, :, tile]
    out = pl.pallas_call(
        _apply_kernel,
        out_shape=jax.ShapeDtypeStruct((B, C, N), x.dtype),
        grid_spec=pltpu.PrefetchScalarGridSpec(
            num_scalar_prefetch=0,
            grid=(B, nt),
            in_specs=[
                pl.BlockSpec((1, C, C), lambda b, n: (b, 0, 0)),
                pl.BlockSpec((1, C, tn), lambda b, n: (b, 0, n)),
            ],
            out_specs=pl.BlockSpec((1, C, tn), lambda b, n: (b, 0, n)),
        ),
        compiler_params=pltpu.CompilerParams(
            dimension_semantics=("parallel", "parallel"),
            vmem_limit_bytes=vmem_limit,
        ),
    )(m, x)

    return out.reshape(B, C, H, W)


# ---------------------------------------------------------------------------
# Params / reference
# ---------------------------------------------------------------------------
def init_params(key, n_in, ks=1):
    """Deterministic init matching the PyTorch module (kaiming_normal_ + spectral_norm)."""
    assert ks == 1  # TODO(synk): ks > 1 would need a real 1-D conv (padding=ks//2) in-kernel.
    fan_in = n_in * ks
    std = math.sqrt(2.0 / fan_in)  # kaiming_normal_: gain sqrt(2), mode=fan_in
    w = jax.random.normal(key, (n_in, n_in), jnp.float32) * std
    # spectral_norm: divide by the largest singular value (exact, vs. power iteration)
    sigma = jnp.linalg.norm(w, ord=2)
    w_sn = w / sigma
    gamma = jnp.zeros((1, 1), jnp.float32)  # nn.Parameter(torch.tensor([0.0]))
    return w_sn, gamma


def reference(x_nchw, weight, gamma):
    B, C, H, W = x_nchw.shape
    x = x_nchw.reshape(B, C, -1)
    convx = jnp.einsum("oc,bcn->bon", weight, x)
    xxT = jnp.einsum("bcn,bdn->bcd", x, x)
    o = jnp.einsum("bcd,bdn->bcn", xxT, convx)
    o = gamma[0, 0] * o + x
    return o.reshape(B, C, H, W)


if __name__ == "__main__":
    key = jax.random.PRNGKey(0)
    xkey, wkey = jax.random.split(key)

    B, C, H, W = 2, 4, 16, 16
    x = jax.random.normal(xkey, (B, C, H, W), jnp.float32)
    weight, gamma = init_params(wkey, C, ks=1)
    # use a non-zero gamma so the attention path is actually exercised
    gamma = gamma + 0.5

    out = simple_self_attention(x, weight, gamma)
    jax.block_until_ready(out)

    ref = reference(x, weight, gamma)
    assert out.shape == (B, C, H, W)
    # bf16 MXU inputs (f32 accumulation) -> loosen tolerance vs. the f32 reference.
    err = float(jnp.max(jnp.abs(out - ref)))
    scale = float(jnp.max(jnp.abs(ref))) + 1e-6
    assert err <= 2e-2 * scale, (err, scale)

    print("KERNEL_OK")
</pallas_src>

<mosaic_0001>
module attributes {stable_mosaic.version = 11 : i64} {
  func.func @_xxt_m_kernel(%arg0: i32, %arg1: i32, %arg2: memref<1x1xf32, #tpu.memory_space<smem>>, %arg3: memref<4x4xbf16, #tpu.memory_space<vmem>>, %arg4: memref<1x4x256xf32, #tpu.memory_space<vmem>>, %arg5: memref<1x4x4xbf16, #tpu.memory_space<vmem>>, %arg6: memref<4x4xf32, #tpu.memory_space<vmem>>) attributes {dimension_semantics = [#tpu.dimension_semantics<parallel>, #tpu.dimension_semantics<arbitrary>], iteration_bounds = array<i64: 2, 1>, scalar_prefetch = 0 : i64, scratch_operands = 1 : i64, tpu.core_type = #tpu.core_type<tc>, window_params = [{transform_indices = @transform_0, window_bounds = array<i64: 1, 1>}, {pipeline_mode = #tpu.pipeline_mode<synchronous>, transform_indices = @transform_1, window_bounds = array<i64: 4, 4>}, {transform_indices = @transform_2, window_bounds = array<i64: 1, 4, 256>}, {transform_indices = @transform_3, window_bounds = array<i64: 1, 4, 4>}]} {
    %c0_i32 = arith.constant 0 : i32
    %0 = arith.cmpi eq, %arg1, %c0_i32 : i32
    %1 = arith.extui %0 : i1 to i32
    %c0_i32_0 = arith.constant 0 : i32
    %2 = arith.cmpi ne, %1, %c0_i32_0 : i32
    scf.if %2 {
      %cst_9 = arith.constant 0.000000e+00 : f32
      %13 = vector.broadcast %cst_9 : f32 to vector<4x4xf32>
      %c0_10 = arith.constant 0 : index
      %c0_11 = arith.constant 0 : index
      %14 = vector.load %arg6[%c0_10, %c0_11] : memref<4x4xf32, #tpu.memory_space<vmem>>, vector<4x4xf32>
      tpu.vector_store %arg6[%c0_10, %c0_11], %13 {strides = array<i32>} : memref<4x4xf32, #tpu.memory_space<vmem>>, vector<4x4xf32>,
    } else {
    }
    %c0 = arith.constant 0 : index
    %c0_1 = arith.constant 0 : index
    %c0_2 = arith.constant 0 : index
    %3 = vector.load %arg4[%c0, %c0_1, %c0_2] : memref<1x4x256xf32, #tpu.memory_space<vmem>>, vector<1x4x256xf32>
    %4 = vector.shape_cast %3 : vector<1x4x256xf32> to vector<4x256xf32>
    %5 = arith.truncf %4 : vector<4x256xf32> to vector<4x256xbf16>
    %c0_3 = arith.constant 0 : index
    %c0_4 = arith.constant 0 : index
    %6 = vector.load %arg6[%c0_3, %c0_4] : memref<4x4xf32, #tpu.memory_space<vmem>>, vector<4x4xf32>
    %cst = arith.constant dense<0.000000e+00> : vector<4x4xf32>
    %7 = tpu.matmul %5, %5, %cst {dimension_numbers = #tpu.dot_dimension_numbers<[1], [1], [0], [0], [0, 0, 1, 0], [], []>} : vector<4x256xbf16>, vector<4x256xbf16>, vector<4x4xf32> -> vector<4x4xf32>
    %8 = arith.addf %6, %7 : vector<4x4xf32>
    %c0_5 = arith.constant 0 : index
    %c0_6 = arith.constant 0 : index
    %9 = vector.load %arg6[%c0_5, %c0_6] : memref<4x4xf32, #tpu.memory_space<vmem>>, vector<4x4xf32>
    tpu.vector_store %arg6[%c0_5, %c0_6], %8 {strides = array<i32>} : memref<4x4xf32, #tpu.memory_space<vmem>>, vector<4x4xf32>,
    %c0_i32_7 = arith.constant 0 : i32
    %10 = arith.cmpi eq, %arg1, %c0_i32_7 : i32
    %11 = arith.extui %10 : i1 to i32
    %c0_i32_8 = arith.constant 0 : i32
    %12 = arith.cmpi ne, %11, %c0_i32_8 : i32
    scf.if %12 {
      %c0_9 = arith.constant 0 : index
      %c0_10 = arith.constant 0 : index
      %13 = memref.load %arg2[%c0_9, %c0_10] : memref<1x1xf32, #tpu.memory_space<smem>>
      %c0_11 = arith.constant 0 : index
      %c0_12 = arith.constant 0 : index
      %14 = vector.load %arg6[%c0_11, %c0_12] : memref<4x4xf32, #tpu.memory_space<vmem>>, vector<4x4xf32>
      %15 = arith.truncf %14 : vector<4x4xf32> to vector<4x4xbf16>
      %c0_13 = arith.constant 0 : index
      %c0_14 = arith.constant 0 : index
      %16 = vector.load %arg3[%c0_13, %c0_14] : memref<4x4xbf16, #tpu.memory_space<vmem>>, vector<4x4xbf16>
      %cst_15 = arith.constant dense<0.000000e+00> : vector<4x4xf32>
      %17 = tpu.matmul %15, %16, %cst_15 {dimension_numbers = #tpu.dot_dimension_numbers<[1], [0], [0], [1], [0, 0, 1, 1], [], []>} : vector<4x4xbf16>, vector<4x4xbf16>, vector<4x4xf32> -> vector<4x4xf32>
      %18 = vector.broadcast %13 : f32 to vector<4x4xf32>
      %19 = arith.mulf %18, %17 : vector<4x4xf32>
      %20 = arith.truncf %19 : vector<4x4xf32> to vector<4x4xbf16>
      %c0_16 = arith.constant 0 : index
      %c0_17 = arith.constant 0 : index
      %c0_18 = arith.constant 0 : index
      %21 = vector.load %arg5[%c0_16, %c0_17, %c0_18] : memref<1x4x4xbf16, #tpu.memory_space<vmem>>, vector<1x4x4xbf16>
      %22 = vector.shape_cast %21 : vector<1x4x4xbf16> to vector<4x4xbf16>
      %23 = vector.shape_cast %20 : vector<4x4xbf16> to vector<1x4x4xbf16>
      tpu.vector_store %arg5[%c0_16, %c0_17, %c0_18], %23 {strides = array<i32>} : memref<1x4x4xbf16, #tpu.memory_space<vmem>>, vector<1x4x4xbf16>,
    } else {
    }
    return
  }
  func.func @transform_0(%arg0: i32, %arg1: i32) -> (i32, i32) {
    %c0_i32 = arith.constant 0 : i32
    %c0_i32_0 = arith.constant 0 : i32
    %c0_i32_1 = arith.constant 0 : i32
    return %c0_i32, %c0_i32_0 : i32, i32
  }
  func.func @transform_1(%arg0: i32, %arg1: i32) -> (i32, i32) {
    %c0_i32 = arith.constant 0 : i32
    %c0_i32_0 = arith.constant 0 : i32
    %c0_i32_1 = arith.constant 0 : i32
    return %c0_i32, %c0_i32_0 : i32, i32
  }
  func.func @transform_2(%arg0: i32, %arg1: i32) -> (i32, i32, i32) {
    %c0_i32 = arith.constant 0 : i32
    %c0_i32_0 = arith.constant 0 : i32
    return %arg0, %c0_i32, %arg1 : i32, i32, i32
  }
  func.func @transform_3(%arg0: i32, %arg1: i32) -> (i32, i32, i32) {
    %c0_i32 = arith.constant 0 : i32
    %c0_i32_0 = arith.constant 0 : i32
    %c0_i32_1 = arith.constant 0 : i32
    return %arg0, %c0_i32, %c0_i32_0 : i32, i32, i32
  }
}

</mosaic_0001>

<bundles_post_ra>
// kernel: tpu_custom_call.1
= control target key start
LH: loop header
LB: loop body
LE: loop exit
PB: predicated region body
PF: predicated region fallthrough
CT: control target
= control target key end

     0   :  { %s825_s0 = inlined_call_operand.<no memory space> [shape: f32[1,1], index: 0, kind: input, shape index: {}]   ;;  %s826_s1 = inlined_call_operand.vmem [shape: bf16[4,4], index: 1, kind: input, shape index: {}]   ;;  %s827_s2 = inlined_call_operand.hbm [shape: f32[2,4,256], index: 2, kind: input, shape index: {}]   ;;  %s828_s3 = inlined_call_operand.hbm [shape: bf16[2,4,4], index: 3, kind: output, shape index: {}]  }
   0x1   :  { %8 = sst [smem:[#allocation3]] %s825_s0 }
   0x2   :  { %9 = vsyncpa [#allocation5], 0 }
   0x3   :  { %11 = vsyncpa [#allocation5 + $0x1], 0 }
   0x4   :  { %12 = vsyncpa [#allocation6], 0 }
   0x5   :  { %14 = vsyncpa [#allocation6 + $0x1], 0  ;;  %s647_s14 = smov 0   ;;  %s649_s15 = smov 0  }
   0x6   :  { %s651_s16 = smov 0   ;;  %s653_s17 = smov 0  }
   0x7   :  { %s655_s18 = smov 0   ;;  %s657_s19 = smov 0  }
   0x8 LB: > { %s417_s0 = sadd.s32 4294967295, %s618_s19   ;;  %s418_s20 = sadd.s32 4294967294, %s618_s19   ;;  %s618_s19 = sphi %s657_s19, %s20_s19   ;;  %s614_s18 = sphi %s655_s18, %s844_s18   ;;  %s610_s17 = sphi %s653_s17, %s843_s17   ;;  %s606_s16 = sphi %s651_s16, %s842_s16   ;;  %s602_s15 = sphi %s649_s15, %s841_s15   ;;  %s598_s14 = sphi %s647_s14, %s840_s14  }
   0x9   : > { %s32_s21 = sadd.s32 1, %s614_s18  ;;  %s83_s22 = sadd.s32 1, %s606_s16 }
   0xa   : > { %p34_p0 = scmp.ge.s32.totalorder %s32_s21, 2  ;;  %p90_p1 = scmp.ne.s32.totalorder %s606_s16, %s602_s15 }
   0xb   : > { %p91_p2 = scmp.eq.s32.totalorder %s618_s19, 0  ;;  %p96_p3 = scmp.ne.s32.totalorder %s602_s15, %s598_s14 }
   0xc   : > { %s846_s21 = smov (%p34_p0, %s32_s21), 0  ;;  %p97_p5 = scmp.eq.s32.totalorder %s417_s0, 0 }
   0xd   : > { %p688_p4 = por %p91_p2, %p90_p1  ;;  %s78_s24 = ssub.s32 %s614_s18, %s846_s21 }
   0xe   : > { %p120_p6 = scmp.eq.s32.totalorder %s417_s0, 1  ;;  %p81_p7 = scmp.eq.s32.totalorder %s78_s24, 0 }
   0xf   : > { %p694_p8 = por %p97_p5, %p96_p3  ;;  %p126_p10 = scmp.eq.s32.totalorder %s418_s20, 1 }
  0x10   : > { %p698_p9 = por %p120_p6, %p90_p1  ;;  %p453_p13 = scmp.lt.s32.totalorder %s618_s19, 2 }
  0x11   : > { %s703_s27 = scalar_select %p81_p7, %s606_s16, %s83_s22  }
  0x12   : > { %s832_s26 = scalar_select %p698_p9, 1, 0 }
  0x13   : > { %p705_p11 = por %p126_p10, %p96_p3  ;;  %s152_s29 = sand.u32 1, %s606_s16  }
  0x14   : > { %s421_s30 = sshll.u32 %s152_s29, 3  ;;  %s432_s4 = sshll.u32 %s614_s18, 7 }
  0x15   : > { %s833_s28 = scalar_select %p705_p11, 1, 0 }
  0x16   : > { %s716_s7 = scalar_lea.hbm %s827_s2, %s432_s4  ;;  %s156_s8 = scalar_lea.vmem [#allocation4], %s421_s30 }
  0x17   : > { %s166_s9 = sshll.u32 %s156_s8, 4  ;;  %p722_p0 = pnand %p453_p13, %p688_p4  ;;  %s718_s9 = int_to_ptr.vmem [resolvable:$true] %s166_s9 }
  0x18   : > { %s153_s11 = scalar_lea.sflag [#allocation5], %s152_s29  ;;  %s506_s12 = scalar_lea.hbm %s716_s7, 128 }
  0x19   : > { %p507_p3 = scmp.ne.s32.totalorder %s716_s7, %s506_s12  ;;  %p508_p5 = pneg %p722_p0 }
  0x1a   : > { %s511_s20 = scalar_lea.hbm %s827_s2, 256  ;;  %p512_p4 = scmp.lt.u32.totalorder %s716_s7, %s827_s2 }
  0x1b   : > { %p509_p6 = pnand %p508_p5, %p507_p3  ;;  %p513_p10 = scmp.lt.u32.totalorder %s511_s20, %s506_s12 }
  0x1c   : > { %p515_p12 = scmp.lt.u32.totalorder %s506_s12, %s716_s7 }
  0x1d   : > { %p510_p7 = pneg %p509_p6  ;;  %p514_p13 = por %p513_p10, %p512_p4 }
  0x1f   : > { %p516_p1 = por %p515_p12, %p514_p13 }
  0x21   : > { %p517_p2 = pnand %p516_p1, %p510_p7 }
  0x23   : > { %520 = shalt.err (!%p517_p2)
}
  0x24   : > { %s521_s24 = scalar_lea.vmem %s718_s9, 128  ;;  %s620_s29 = smov [#allocation4]  }
  0x25   : > { %p522_p3 = scmp.ne.s32.totalorder %s718_s9, %s521_s24  ;;  %s526_s30 = sshll.u32 %s620_s29, 4  ;;  %s527_s30 = int_to_ptr.vmem [resolvable:$false] %s526_s30 }
  0x26   : > { %s528_s4 = scalar_lea.vmem %s527_s30, 256  ;;  %p529_p9 = scmp.lt.s32.totalorder %s718_s9, %s527_s30 }
  0x27   : > { %p524_p6 = pnand %p522_p3, %p508_p5  ;;  %p530_p4 = scmp.lt.s32.totalorder %s528_s4, %s521_s24 }
  0x29   : > { %p525_p11 = pneg %p524_p6  ;;  %p531_p10 = por %p530_p4, %p529_p9 }
  0x2b   : > { %p532_p12 = pnand %p531_p10, %p525_p11 }
  0x2d   : > { %535 = shalt.err (!%p532_p12)
}
  0x2e   : > { %448 = dma.hbm_to_vmem [thread:$0]  (!%p722_p0), %s716_s7, 128, %s718_s9, %s153_s11  }
  0x2f   : > { %p835_p1 = scmp.lt.s32.totalorder %s618_s19, 3  ;;  %p836_p2 = scmp.ge.s32.totalorder %s618_s19, 1 }
  0x31   : > { %p172_p5 = pnand %p836_p2, %p835_p1 }
  0x32   : > { %s758_s5 = sand.u32 (!%p172_p5), 1, %s602_s15  }
  0x33   : > { %175 = sbr.rel (%p172_p5) target bundleno = 526 (0x20e), region = 32  ;;  %s425_s6 = sshll.u32 (!%p172_p5), %s758_s5, 3 }
  0x34   : > { %s178_s8 = scalar_lea.sflag (!%p172_p5), [#allocation5], %s758_s5  ;;  %s181_s12 = scalar_lea.vmem (!%p172_p5), [#allocation4], %s425_s6 }
  0x3a   : > { %589 = dma.done.wait (%p694_p8), %s178_s8, 128  }
  0x3b   : > { %591 = vsyncadd (%p694_p8), %s178_s8, 4294967168  ;;  %vm210_vm0 = vcmask 27648   ;;  %v621_v0 = vmov 0.0   ;;  %v212_v1 = vld [vmem:[%s181_s12] sm:$0xff]  ;;  %v268_v5 = vld [vmem:[%s826_s1] sm:$0x3] }
  0x3c   : > { %211 = vst.msk [vmem:[#allocation2] sm:$0xf] %vm210_vm0, %v621_v0  ;;  %435 = vmatprep.subr.bf16.mxu1 %v621_v0  ;;  %v214_v2 = vcombine.high %v212_v1, %v212_v1  ;;  %v216_v3 = vpack.c.bf16 %v212_v1, %v212_v1  ;;  %vm273_vm1 = vcmask 1041408   ;;  %vm622_vm2 = vmmov 0   ;;  %s265_s25 = sld [smem:[#allocation3]]  ;;  %s426_s10 = sshll.u32 %s758_s5, 1 }
  0x3d   : > { %v275_v6 = vsel %vm273_vm1, %v268_v5, 0  ;;  %437 = vmatprep.mubr.msk.bf16.mxu1 %vm622_vm2, %v621_v0  ;;  %vm269_vm3 = vcmask 31744   ;;  %s429_s11 = sshll.u32 %s610_s17, 5  ;;  %s203_s13 = scalar_lea.vmem [#allocation7], %s426_s10  ;;  %vm320_vm4 = vcmask 25600  }
  0x3e   : > { %v217_v4 = vpack.c.bf16 %v214_v2, %v214_v2  ;;  %436 = vmatpush3.bf16.msra.mxu1 %v275_v6  ;;  %s336_s0 = sshll.u32 %s203_s13, 4  ;;  %s776_s23 = scalar_lea.hbm %s828_s3, %s429_s11  ;;  %s778_s0 = int_to_ptr.vmem [resolvable:$true] %s336_s0 }
  0x3f   : > { %s323_s17 = scalar_lea.sflag [#allocation6], %s758_s5  ;;  %s536_s24 = scalar_lea.vmem %s778_s0, 32 }
  0x40   : > { %219 = vmatprep.subr.bf16.mxu0 %v217_v4  ;;  %251 = vmatprep.mubr.bf16.mxu0 %v217_v4  ;;  %p537_p8 = scmp.ne.s32.totalorder %s778_s0, %s536_s24  ;;  %p837_p9 = scmp.ne.s32.totalorder %s832_s26, 0 }
  0x41   : > { %220 = vmatpush1.bf16.xpose.msra.mxu0 %v216_v3  ;;  %s623_s29 = smov [#allocation7]  }
  0x42   : > { %v317_v15 = vstv %s265_s25  ;;  %p538_p11 = pnand %p537_p8, %p837_p9  ;;  %s540_s30 = sshll.u32 %s623_s29, 4  ;;  %s541_s30 = int_to_ptr.vmem [resolvable:$false] %s540_s30 }
  0x43   : > { %v218_v7 = vld [vmem:[#allocation2] sm:$0xf]  ;;  %s542_s4 = scalar_lea.vmem %s541_s30, 64  ;;  %p543_p7 = scmp.lt.s32.totalorder %s778_s0, %s541_s30 }
  0x44   : > { %p539_p0 = pneg %p538_p11  ;;  %p544_p13 = scmp.lt.s32.totalorder %s542_s4, %s536_s24 }
  0x46   : > { %p545_p3 = por %p544_p13, %p543_p7 }
  0x48   : > { %252 = vmatmul.mubr.bf16.vlgmr.msra.gmra.mrb[0].mxu0 %v216_v3  ;;  %p546_p6 = pnand %p545_p3, %p539_p0 }
 0x11b   : > { %v253_v8 = vpop.f32.mrb[0].mxu0 }
 0x11c   : > { %v259_v9 = vadd.f32 %v253_v8, %v218_v7  ;;  %v255_v10 = vpop.f32.mrb[1].mxu0 }
 0x11d   : > { %v256_v11 = vpop.f32.mrb[2].mxu0 }
 0x11e   : > { %261 = vst.msk [vmem:[#allocation2] sm:$0xf] %vm210_vm0, %v259_v9  ;;  %v257_v12 = vpop.f32.mrb[3].mxu0 }
 0x125   : > { %v266_v13 = vld [vmem:[#allocation2] sm:$0xf] }
 0x126   : > { %v267_v14 = vpack.c.bf16 %v266_v13, %v266_v13 }
 0x128   : > { %438 = vmatmul.mubr.msk.bf16.vlgmr.msra.gmra.mrb[0].mxu1 %vm269_vm3, %v267_v14 }
 0x1fb   : > { %v311_v16 = vpop.f32.mrb[0].mxu1 }
 0x1fc   : > { %v318_v17 = vmul.f32 %v317_v15, %v311_v16  ;;  %v439_v18 = vpop.f32.mrb[1].mxu1 }
 0x1fd   : > { %v314_v19 = vpop.f32.mrb[2].mxu1 }
 0x1fe   : > { %v319_v20 = vpack.c.bf16 %v318_v17, %v318_v17  ;;  %v440_v21 = vpop.f32.mrb[3].mxu1 }
 0x200   : > { %321 = vst.msk [vmem:[%s203_s13] sm:$0x3] %vm320_vm4, %v319_v20 }
 0x201   : > { %549 = shalt.err (!%p546_p6)
}
 0x202   : > { %s550_s5 = scalar_lea.hbm %s776_s23, 32  ;;  %s554_s12 = scalar_lea.hbm %s828_s3, 64 }
 0x203   : > { %p551_p4 = scmp.ne.s32.totalorder %s776_s23, %s550_s5  ;;  %p555_p1 = scmp.lt.u32.totalorder %s776_s23, %s828_s3 }
 0x204   : > { %p556_p2 = scmp.lt.u32.totalorder %s554_s12, %s550_s5  ;;  %p558_p8 = scmp.lt.u32.totalorder %s550_s5, %s776_s23 }
 0x205   : > { %p552_p10 = pnand %p551_p4, %p837_p9 }
 0x206   : > { %p557_p5 = por %p556_p2, %p555_p1 }
 0x207   : > { %p553_p12 = pneg %p552_p10 }
 0x208   : > { %p559_p11 = por %p558_p8, %p557_p5 }
 0x20a   : > { %p560_p0 = pnand %p559_p11, %p553_p12 }
 0x20c   : > { %563 = shalt.err (!%p560_p0)
}
 0x20d   : > { %443 = dma.vmem_to_hbm [thread:$0]  (%p837_p9), %s778_s0, 32, %s776_s23, %s323_s17  }
 0x20e PF: > { %s348_s25 = sand.u32 1, %s598_s14   ;;  %p838_p7 = scmp.ne.s32.totalorder %s833_s28, 0 }
 0x20f   : > { %p839_p13 = scmp.ge.s32.totalorder %s618_s19, 2  ;;  %s349_s10 = scalar_lea.sflag [#allocation6], %s348_s25 }
 0x211   : > { %p450_p3 = pnand %p839_p13, %p838_p7 }
 0x213   : > { %593 = dma.done.wait (!%p450_p3), %s349_s10, 32  }
 0x214   : > { %595 = vsyncadd (!%p450_p3), %s349_s10, 4294967264  ;;  %s20_s19 = sadd.s32 1, %s618_s19   ;;  %s840_s14 = smov %s602_s15 }
 0x215   : > { %p17_p6 = scmp.ge.s32.totalorder %s20_s19, 4   ;;  %s841_s15 = smov %s606_s16 }
 0x216   : > { %s842_s16 = smov %s703_s27  ;;  %s843_s17 = smov %s614_s18 }
 0x217   : > { %s844_s18 = smov %s846_s21  ;;  %19 = sbr.rel (!%p17_p6) target bundleno = 8 (0x8), region = 85 }
 0x21e   :  { %354 = vsyncpa [#allocation5], 1 }
 0x21f   :  { %356 = vsyncpa [#allocation5 + $0x1], 1 }
 0x220   :  { %357 = vsyncpa [#allocation6], 1 }
 0x221   :  { %359 = vsyncpa [#allocation6 + $0x1], 1 }

</bundles_post_ra>
